<compile_context>
chip_gen: v5e
topology: v5e:2x2
jax: 0.10.0
libtpu: 0.0.40
codegen_flags: <defaults>
</compile_context>

<pallas_src>
import functools

import jax
import jax.numpy as jnp
from jax.experimental import pallas as pl
from jax.experimental.pallas import tpu as pltpu


def _conv_bn_kernel(x_ref, w_ref, shift_ref, o_ref, *, apply_relu):
    """One (batch, spatial-tile) block.

    x_ref:     (1, 9*cin, st)  im2col patches, spatial on lanes
    w_ref:     (cout, 9*cin)   conv weights with BN scale folded in
    shift_ref: (cout, 1)       BN shift (beta - mean*scale)
    o_ref:     (1, cout, st)   NC(HW) output block
    """
    # Single MXU contraction over K = 9*cin; result is already lane-dense (st lanes).
    y = jnp.dot(w_ref[...], x_ref[0], preferred_element_type=jnp.float32)
    y = y + shift_ref[...]                      # BN shift, broadcast over lanes
    if apply_relu:
        y = jnp.maximum(y, 0.0)
    o_ref[0] = y.astype(o_ref.dtype)


def _pick_spatial_tile(s):
    """Largest tile that is a multiple of 128, divides s, and is <= 1024; else full."""
    if s % 128 != 0:
        return s
    st = 128
    while st * 2 <= min(s, 1024) and s % (st * 2) == 0:
        st *= 2
    return st


def conv3x3_s2_bn(x_nchw, w_hwio, scale, shift, apply_relu):
    """x_nchw: (N,Cin,H,W) f32; w_hwio: (3,3,Cin,Cout); scale/shift: (Cout,) folded BN."""
    n, cin, h, w = x_nchw.shape
    assert h % 2 == 0 and w % 2 == 0, "even spatial dims assumed (stride-2 downsample)"
    oh, ow = h // 2, w // 2
    s = oh * ow
    cout = w_hwio.shape[-1]

    # ---- glue: fold BN scale into the weights; keep only the shift for the kernel ----
    wk = (w_hwio * scale[None, None, None, :]).reshape(9 * cin, cout).T  # (cout, 9*cin)
    shift_col = shift.reshape(cout, 1)

    # ---- glue: im2col, channels-major on sublanes, flattened spatial on lanes --------
    # tap (kh,kw) at output pixel (i,j) reads x_pad[2i+kh, 2j+kw]; concat order matches
    # the (kh, kw, cin) flattening of the HWIO weights above.
    xp = jnp.pad(x_nchw, ((0, 0), (0, 0), (1, 1), (1, 1)))
    taps = [xp[:, :, kh:kh + 2 * oh:2, kw:kw + 2 * ow:2]
            for kh in range(3) for kw in range(3)]
    patches = jnp.concatenate(taps, axis=1).reshape(n, 9 * cin, s)

    st = _pick_spatial_tile(s)
    grid = (n, s // st)

    kernel = functools.partial(_conv_bn_kernel, apply_relu=apply_relu)
    out = pl.pallas_call(
        kernel,
        out_shape=jax.ShapeDtypeStruct((n, cout, s), jnp.float32),
        grid=grid,
        in_specs=[pl.BlockSpec((1, 9 * cin, st), lambda b, si: (b, 0, si)),
                  pl.BlockSpec((cout, 9 * cin), lambda b, si: (0, 0)),
                  pl.BlockSpec((cout, 1), lambda b, si: (0, 0))],
        out_specs=pl.BlockSpec((1, cout, st), lambda b, si: (b, 0, si)),
        compiler_params=pltpu.CompilerParams(
            dimension_semantics=("parallel", "parallel"),
            vmem_limit_bytes=64 * 1024 * 1024),
    )(patches, wk, shift_col)

    return out.reshape(n, cout, oh, ow)   # (N, Cout, OH, OW) == NCHW, no transpose


class DownsampleEdgePallas:
    """JAX/Pallas port of DownsampleEdge. BatchNorm runs in inference mode
    (running statistics), folded into a per-channel scale/shift.
    # TODO(synk): training-mode BatchNorm (batch-stat computation / running-stat
    # updates) is not implemented; inference semantics only."""

    def __init__(self, input_channels, output_channels, down_num, key):
        if input_channels >= output_channels:
            raise ValueError(
                f'input_channels >= output_channels: {input_channels} >= '
                f'{output_channels}, downsample node only support '
                f'input_channels < output_channels')
        self.layers = []
        eps = 1e-5
        keys = jax.random.split(key, down_num * 5)
        prev = input_channels
        for i in range(down_num):
            cin = input_channels if i == 0 else prev
            cout = output_channels // 2 ** (down_num - 1 - i)
            k = keys[i * 5:(i + 1) * 5]
            fan_in = cin * 9
            w = jax.random.normal(k[0], (3, 3, cin, cout), jnp.float32) * (2.0 / fan_in) ** 0.5
            gamma = jax.random.uniform(k[1], (cout,), jnp.float32, 0.5, 1.5)
            beta = jax.random.normal(k[2], (cout,), jnp.float32) * 0.1
            run_mean = jax.random.normal(k[3], (cout,), jnp.float32) * 0.1
            run_var = jax.random.uniform(k[4], (cout,), jnp.float32, 0.5, 1.5)
            scale = gamma / jnp.sqrt(run_var + eps)
            shift = beta - run_mean * scale
            self.layers.append((w, scale, shift))
            prev = cout

    def __call__(self, x_nchw):
        x = x_nchw.astype(jnp.float32)          # NCHW end-to-end, no layout transposes
        last = len(self.layers) - 1
        for i, (w, scale, shift) in enumerate(self.layers):
            x = conv3x3_s2_bn(x, w, scale, shift, apply_relu=(i == last))
        return x


def _reference(x_nchw, layers):
    """Pure-JAX (XLA conv) reference for validation."""
    y = x_nchw.astype(jnp.float32)
    last = len(layers) - 1
    for i, (w, scale, shift) in enumerate(layers):
        w_oihw = jnp.transpose(w, (3, 2, 0, 1))
        y = jax.lax.conv_general_dilated(
            y, w_oihw, window_strides=(2, 2), padding=((1, 1), (1, 1)),
            dimension_numbers=('NCHW', 'OIHW', 'NCHW'),
            precision=jax.lax.Precision.HIGHEST)
        y = y * scale[None, :, None, None] + shift[None, :, None, None]
        if i == last:
            y = jnp.maximum(y, 0.0)
    return y


if __name__ == "__main__":
    key = jax.random.PRNGKey(0)
    kx, kp = jax.random.split(key)

    # small shapes: batch=2, input_channels=4, output_channels=16, down_num=2, spatial=16
    x = jax.random.normal(kx, (2, 4, 16, 16), jnp.float32)
    model = DownsampleEdgePallas(input_channels=4, output_channels=16, down_num=2, key=kp)

    out = model(x)
    out = jax.block_until_ready(out)
    assert out.shape == (2, 16, 4, 4), out.shape

    ref = _reference(x, model.layers)
    if not bool(jnp.allclose(out, ref, atol=1e-3, rtol=1e-3)):
        raise AssertionError(
            f"mismatch vs reference, max abs err = {float(jnp.max(jnp.abs(out - ref)))}")

    print("KERNEL_OK")
</pallas_src>

<mosaic_0001>
module attributes {stable_mosaic.version = 11 : i64} {
  func.func @_conv_bn_kernel(%arg0: i32, %arg1: i32, %arg2: memref<1x36x64xf32, #tpu.memory_space<vmem>>, %arg3: memref<8x36xf32, #tpu.memory_space<vmem>>, %arg4: memref<8x1xf32, #tpu.memory_space<vmem>>, %arg5: memref<1x8x64xf32, #tpu.memory_space<vmem>>) attributes {dimension_semantics = [#tpu.dimension_semantics<parallel>, #tpu.dimension_semantics<parallel>], iteration_bounds = array<i64: 2, 1>, scalar_prefetch = 0 : i64, scratch_operands = 0 : i64, tpu.core_type = #tpu.core_type<tc>, window_params = [{transform_indices = @transform_0, window_bounds = array<i64: 1, 36, 64>}, {pipeline_mode = #tpu.pipeline_mode<synchronous>, transform_indices = @transform_1, window_bounds = array<i64: 8, 36>}, {pipeline_mode = #tpu.pipeline_mode<synchronous>, transform_indices = @transform_2, window_bounds = array<i64: 8, 1>}, {transform_indices = @transform_3, window_bounds = array<i64: 1, 8, 64>}]} {
    %c0 = arith.constant 0 : index
    %c0_0 = arith.constant 0 : index
    %0 = vector.load %arg3[%c0, %c0_0] : memref<8x36xf32, #tpu.memory_space<vmem>>, vector<8x36xf32>
    %c0_1 = arith.constant 0 : index
    %c0_2 = arith.constant 0 : index
    %c0_3 = arith.constant 0 : index
    %1 = vector.load %arg2[%c0_1, %c0_2, %c0_3] : memref<1x36x64xf32, #tpu.memory_space<vmem>>, vector<1x36x64xf32>
    %2 = vector.shape_cast %1 : vector<1x36x64xf32> to vector<36x64xf32>
    %cst = arith.constant dense<0.000000e+00> : vector<8x64xf32>
    %3 = tpu.matmul %0, %2, %cst {dimension_numbers = #tpu.dot_dimension_numbers<[1], [0], [0], [1], [0, 0, 1, 1], [], []>} : vector<8x36xf32>, vector<36x64xf32>, vector<8x64xf32> -> vector<8x64xf32>
    %c0_4 = arith.constant 0 : index
    %c0_5 = arith.constant 0 : index
    %4 = vector.load %arg4[%c0_4, %c0_5] : memref<8x1xf32, #tpu.memory_space<vmem>>, vector<8x1xf32>
    %5 = vector.broadcast %4 : vector<8x1xf32> to vector<8x64xf32>
    %6 = arith.addf %3, %5 : vector<8x64xf32>
    %c0_6 = arith.constant 0 : index
    %c0_7 = arith.constant 0 : index
    %c0_8 = arith.constant 0 : index
    %7 = vector.load %arg5[%c0_6, %c0_7, %c0_8] : memref<1x8x64xf32, #tpu.memory_space<vmem>>, vector<1x8x64xf32>
    %8 = vector.shape_cast %7 : vector<1x8x64xf32> to vector<8x64xf32>
    %9 = vector.shape_cast %6 : vector<8x64xf32> to vector<1x8x64xf32>
    tpu.vector_store %arg5[%c0_6, %c0_7, %c0_8], %9 {strides = array<i32>} : memref<1x8x64xf32, #tpu.memory_space<vmem>>, vector<1x8x64xf32>,
    return
  }
  func.func @transform_0(%arg0: i32, %arg1: i32) -> (i32, i32, i32) {
    %c0_i32 = arith.constant 0 : i32
    %c0_i32_0 = arith.constant 0 : i32
    return %arg0, %c0_i32, %arg1 : i32, i32, i32
  }
  func.func @transform_1(%arg0: i32, %arg1: i32) -> (i32, i32) {
    %c0_i32 = arith.constant 0 : i32
    %c0_i32_0 = arith.constant 0 : i32
    %c0_i32_1 = arith.constant 0 : i32
    return %c0_i32, %c0_i32_0 : i32, i32
  }
  func.func @transform_2(%arg0: i32, %arg1: i32) -> (i32, i32) {
    %c0_i32 = arith.constant 0 : i32
    %c0_i32_0 = arith.constant 0 : i32
    %c0_i32_1 = arith.constant 0 : i32
    return %c0_i32, %c0_i32_0 : i32, i32
  }
  func.func @transform_3(%arg0: i32, %arg1: i32) -> (i32, i32, i32) {
    %c0_i32 = arith.constant 0 : i32
    %c0_i32_0 = arith.constant 0 : i32
    return %arg0, %c0_i32, %arg1 : i32, i32, i32
  }
}

</mosaic_0001>

<bundles_post_ra>
// kernel: tpu_custom_call.1
= control target key start
LH: loop header
LB: loop body
LE: loop exit
PB: predicated region body
PF: predicated region fallthrough
CT: control target
= control target key end

     0   :  { %8 = vsyncpa [#allocation3], 0  ;;  %s602_s0 = inlined_call_operand.vmem [shape: f32[2,36,64], index: 0, kind: input, shape index: {}]   ;;  %s603_s1 = inlined_call_operand.vmem [shape: f32[8,36], index: 1, kind: input, shape index: {}]   ;;  %s604_s2 = inlined_call_operand.vmem [shape: f32[8,1], index: 2, kind: input, shape index: {}]   ;;  %s605_s3 = inlined_call_operand.hbm [shape: f32[2,8,64], index: 3, kind: output, shape index: {}]  }
   0x1   :  { %10 = vsyncpa [#allocation3 + $0x1], 0  ;;  %s499_s12 = smov 0   ;;  %s501_s13 = smov 0  }
   0x2   :  { %s503_s14 = smov 0   ;;  %s505_s15 = smov 0  }
   0x3   :  { %s507_s16 = smov 0   ;;  %s509_s17 = smov 0  }
   0x4 LB: > { %s327_s18 = sadd.s32 4294967295, %s476_s17   ;;  %s328_s19 = sadd.s32 4294967294, %s476_s17   ;;  %s476_s17 = sphi %s509_s17, %s16_s17   ;;  %s472_s16 = sphi %s507_s16, %s612_s16   ;;  %s468_s15 = sphi %s505_s15, %s611_s15   ;;  %s464_s14 = sphi %s503_s14, %s610_s14   ;;  %s460_s13 = sphi %s501_s13, %s609_s13   ;;  %s456_s12 = sphi %s499_s12, %s608_s12  }
   0x5   : > { %s28_s20 = sadd.s32 1, %s472_s16  ;;  %s107_s21 = sadd.s32 1, %s464_s14 }
   0x6   : > { %p30_p0 = scmp.ge.s32.totalorder %s28_s20, 2  ;;  %p117_p1 = scmp.ne.s32.totalorder %s464_s14, %s460_s13 }
   0x7   : > { %p118_p2 = scmp.eq.s32.totalorder %s327_s18, 1  ;;  %p123_p3 = scmp.ne.s32.totalorder %s460_s13, %s456_s12 }
   0x8   : > { %s614_s20 = smov (%p30_p0, %s28_s20), 0  ;;  %p124_p5 = scmp.eq.s32.totalorder %s328_s19, 1 }
   0x9   : > { %p539_p4 = por %p118_p2, %p117_p1  ;;  %s102_s23 = ssub.s32 %s472_s16, %s614_s20 }
   0xa   : > { %p331_p6 = scmp.ge.s32.totalorder %s476_s17, 1  ;;  %p105_p7 = scmp.eq.s32.totalorder %s102_s23, 0 }
   0xb   : > { %p546_p8 = por %p124_p5, %p123_p3  ;;  %p159_p9 = scmp.lt.s32.totalorder %s476_s17, 3 }
   0xc   : > { %s552_s25 = scalar_select %p105_p7, %s464_s14, %s107_s21  }
   0xd   : > { %p160_p10 = pnand %p331_p6, %p159_p9 }
   0xe   : > { %p186_p11 = scmp.lt.s32.totalorder (!%p160_p10), %s468_s15, 1  ;;  %s183_s8 = sand.u32 (!%p160_p10), 1, %s460_s13  }
   0xf   : > { %163 = sbr.rel (%p160_p10) target bundleno = 166 (0xa6), region = 32  ;;  %s332_s9 = sshll.u32 (!%p160_p10), %s183_s8, 3 }
  0x10   : > { %s337_s10 = sshll.u32 (!%p160_p10), %s468_s15, 3  ;;  %s185_s21 = scalar_lea.vmem (!%p160_p10), [#allocation2], %s332_s9 }
  0x11   : > { %s248_s19 = scalar_lea.hbm (!%p160_p10), %s605_s3, %s337_s10  ;;  %s250_s23 = sshll.u32 (!%p160_p10), %s185_s21, 4  ;;  %s251_s23 = int_to_ptr.vmem [resolvable:$true] %s250_s23 }
  0x12   : > { %s252_s26 = sshll.u32 (!%p160_p10), %s248_s19, 4  ;;  %s237_s27 = scalar_lea.sflag (!%p160_p10), [#allocation3], %s183_s8  ;;  %s253_s26 = int_to_ptr.hbm [resolvable:$true] %s252_s26 }
  0x13   : > { %s418_s4 = scalar_lea.hbm (!%p160_p10), %s605_s3, 16 }
  0x14   : > { %v200_v0 = vld [vmem:[%s604_s2] sm:$0xff]  ;;  %v478_v1 = vmov 0   ;;  %s187_s28 = scalar_select %p186_p11, %s468_s15, 1  ;;  %vm210_vm0 = vcmask 1043456   ;;  %vm206_vm1 = vcmask 293888   ;;  %vm234_vm2 = vcmask 523264  }
  0x15   : > { %397 = vset.pattern.permute.xlu0 %v478_v1  ;;  %v194_v7 = vld [vmem:[%s603_s1] sm:$0xff] }
  0x16   : > { %203 = vperm.xlu0 %397, %v200_v0   ;;  %s340_s29 = smul.u32 40, %s187_s28  ;;  %s412_s28 = sshra.s32 %s253_s26, 4  ;;  %s413_s28 = int_to_ptr.hbm [resolvable:$true] %s412_s28 }
  0x17   : > { %p419_p1 = scmp.lt.s32.totalorder %s413_s28, %s605_s3 }
  0x18   : > { %s193_s5 = scalar_lea.vmem %s602_s0, %s340_s29  ;;  %s414_s29 = scalar_lea.hbm %s413_s28, 8 }
  0x19   : > { %v199_v2 = vld [vmem:[%s193_s5 + $0x20] sm:$0xf]  ;;  %v198_v3 = vld [vmem:[%s193_s5 + $0x18] sm:$0xff]  ;;  %v197_v4 = vld [vmem:[%s193_s5 + $0x10] sm:$0xff]  ;;  %p415_p12 = scmp.ne.s32.totalorder %s413_s28, %s414_s29  ;;  %p420_p2 = scmp.lt.s32.totalorder %s418_s4, %s414_s29 }
  0x1a   : > { %334 = vmatpush.msk.msra.mxu0 %vm210_vm0, %v199_v2  ;;  %v196_v5 = vld [vmem:[%s193_s5 + $0x8] sm:$0xff]  ;;  %v195_v6 = vld [vmem:[%s193_s5] sm:$0xff] }
  0x1b   : > { %p416_p13 = pnand %p415_p12, %p539_p4  ;;  %p421_p3 = por %p420_p2, %p419_p1 }
  0x1c   : > { %226 = vmatpush.msra.mxu0 %v198_v3 }
  0x1d   : > { %p417_p0 = pneg %p416_p13 }
  0x1e   : > { %227 = vmatpush.msra.mxu0 %v197_v4 }
  0x1f   : > { %p422_p5 = pnand %p421_p3, %p417_p0 }
  0x20   : > { %228 = vmatpush.msra.mxu0 %v196_v5 }
  0x22   : > { %229 = vmatpush.msra.mxu0 %v195_v6 }
  0x23   : > { %335 = vmatmul.msk.f32.vlgmr.msra.gmra.mxu0 %vm206_vm1, %v194_v7 }
  0x88   : > { %v204_v8 = vpop.permute.xlu0 %203 }
  0xa0   : > { %v231_v9 = vpop.f32.mrf.mxu0 }
  0xa1   : > { %v232_v10 = vadd.f32 %v231_v9, %v204_v8 }
  0xa3   : > { %235 = vst.msk [vmem:[%s185_s21] sm:$0xff] %vm234_vm2, %v232_v10 }
  0xa4   : > { %425 = shalt.err (!%p422_p5)
}
  0xa5   : > { %341 = dma.vmem_to_hbm [thread:$0]  (%p539_p4), %s251_s23, 128, %s253_s26, %s237_s27  }
  0xa6 PF: > { %p347_p6 = scmp.ge.s32.totalorder %s476_s17, 2  ;;  %s264_s7 = sand.u32 1, %s456_s12  }
  0xa7   : > { %s265_s8 = scalar_lea.sflag [#allocation3], %s264_s7 }
  0xa8   : > { %p344_p7 = pnand %p347_p6, %p546_p8 }
  0xaa   : > { %p345_p9 = pneg %p344_p7 }
  0xac   : > { %451 = dma.done.wait (%p345_p9), %s265_s8, 128  }
  0xad   : > { %453 = vsyncadd (%p345_p9), %s265_s8, 4294967168  ;;  %s16_s17 = sadd.s32 1, %s476_s17   ;;  %s608_s12 = smov %s460_s13 }
  0xae   : > { %p13_p10 = scmp.ge.s32.totalorder %s16_s17, 4   ;;  %s609_s13 = smov %s464_s14 }
  0xaf   : > { %s610_s14 = smov %s552_s25  ;;  %s611_s15 = smov %s472_s16 }
  0xb0   : > { %s612_s16 = smov %s614_s20  ;;  %15 = sbr.rel (!%p13_p10) target bundleno = 4 (0x4), region = 67 }
  0xb5   :  { %271 = vsyncpa [#allocation3], 1 }
  0xb6   :  { %273 = vsyncpa [#allocation3 + $0x1], 1 }

</bundles_post_ra>
